<compile_context>
chip_gen: v7x
topology: tpu7x:2x2x1
jax: 0.10.0
libtpu: 0.0.40
codegen_flags: <defaults>
</compile_context>

<pallas_src>
import functools
import math

import jax
import jax.numpy as jnp
from jax.experimental import pallas as pl
from jax.experimental.pallas import tpu as pltpu


def _mc_dropout_kernel(x_ref, w1_ref, b1_ref, w2_ref, b2_ref, u_ref, o_ref,
                       *, dropout_rate, num_estimators):
    # ---- estimator-invariant first layer: computed exactly once ------------
    # h = relu(x @ W1 + b1)   shape (B, HID); this is >99% of the FLOPs.
    h = jnp.dot(x_ref[...], w1_ref[...], preferred_element_type=jnp.float32)
    h = jnp.maximum(h + b1_ref[...], 0.0)

    scale = 1.0 / (1.0 - dropout_rate)

    # ---- per-estimator dropout + small output matmul (unrolled, E is small) -
    for e in range(num_estimators):
        keep = u_ref[e] >= dropout_rate                    # P(keep) = 1 - p
        hd = jnp.where(keep, h * scale, 0.0)               # fused mask + scale
        out_e = jnp.dot(hd, w2_ref[...], preferred_element_type=jnp.float32)
        o_ref[e] = (out_e + b2_ref[...]).astype(o_ref.dtype)


def mc_dropout_forward(x_nchw, params, *, num_estimators, dropout_rate, rng_key):
    """Eval-mode MCDropout forward (on_batch=True); returns (E*B, OUT)."""
    if not (0.0 < float(dropout_rate) < 1.0):
        raise ValueError("`dropout_rate` must be in (0, 1) to use MC Dropout.")
    if num_estimators is None or int(num_estimators) <= 0:
        raise ValueError("`num_estimators` must be strictly positive.")

    B = x_nchw.shape[0]
    D = math.prod(x_nchw.shape[1:])
    x = x_nchw.reshape(B, D)
    w1, b1, w2, b2 = params
    HID = w1.shape[1]
    OUT = w2.shape[1]
    E = int(num_estimators)

    # Single well-mixed draw of uniforms for ALL estimators: independent
    # Bernoulli(1-p) keep-masks per estimator, no correlated sequential seeds,
    # and fully portable (no TPU-only PRNG primitives inside the kernel).
    u = jax.random.uniform(rng_key, (E, B, HID), dtype=jnp.float32)

    kernel = functools.partial(
        _mc_dropout_kernel,
        dropout_rate=float(dropout_rate),
        num_estimators=E,
    )

    out = pl.pallas_call(
        kernel,
        out_shape=jax.ShapeDtypeStruct((E, B, OUT), jnp.float32),
        grid=(1,),  # single invocation: no per-estimator pipeline overhead
        in_specs=[
            pl.BlockSpec((B, D), lambda i: (0, 0)),          # x  (flattened NCHW)
            pl.BlockSpec((D, HID), lambda i: (0, 0)),        # W1
            pl.BlockSpec((1, HID), lambda i: (0, 0)),        # b1
            pl.BlockSpec((HID, OUT), lambda i: (0, 0)),      # W2
            pl.BlockSpec((1, OUT), lambda i: (0, 0)),        # b2
            pl.BlockSpec((E, B, HID), lambda i: (0, 0, 0)),  # dropout uniforms
        ],
        out_specs=pl.BlockSpec((E, B, OUT), lambda i: (0, 0, 0)),
        compiler_params=pltpu.CompilerParams(
            dimension_semantics=("arbitrary",)),
    )(x, w1, b1, w2, b2, u)

    # (E, B, OUT) -> (E*B, OUT): matches torch's x.repeat(E, 1, 1, 1) row order.
    return out.reshape(E * B, OUT)


def init_params(key, d_in, d_hidden, d_out):
    k1, k2, k3, k4 = jax.random.split(key, 4)
    w1 = jax.random.normal(k1, (d_in, d_hidden), jnp.float32) * 0.02
    b1 = jax.random.normal(k2, (1, d_hidden), jnp.float32) * 0.02
    w2 = jax.random.normal(k3, (d_hidden, d_out), jnp.float32) * 0.02
    b2 = jax.random.normal(k4, (1, d_out), jnp.float32) * 0.02
    return w1, b1, w2, b2


if __name__ == "__main__":
    key = jax.random.PRNGKey(0)
    kx, kp, kd = jax.random.split(key, 3)

    B, C, H, W = 2, 4, 16, 16          # NCHW input
    D = C * H * W                       # 1024
    HID, OUT = 128, 8
    NUM_ESTIMATORS = 4
    DROPOUT_RATE = 0.5                  # model.dropout_rate > 0 (required)

    x = jax.random.normal(kx, (B, C, H, W), jnp.float32)
    params = init_params(kp, D, HID, OUT)

    y = mc_dropout_forward(
        x, params,
        num_estimators=NUM_ESTIMATORS,
        dropout_rate=DROPOUT_RATE,
        rng_key=kd,
    )
    y = jax.block_until_ready(y)

    assert y.shape == (NUM_ESTIMATORS * B, OUT), y.shape
    assert y.dtype == jnp.float32
    assert bool(jnp.all(jnp.isfinite(y)))
    # sanity: independent dropout masks => different estimator outputs (w.h.p.)
    assert not bool(jnp.allclose(y[:B], y[B:2 * B]))

    print("KERNEL_OK")
</pallas_src>

<mosaic_0001>
module attributes {stable_mosaic.version = 11 : i64} {
  func.func @_mc_dropout_kernel(%arg0: i32, %arg1: memref<2x1024xf32, #tpu.memory_space<vmem>>, %arg2: memref<1024x128xf32, #tpu.memory_space<vmem>>, %arg3: memref<1x128xf32, #tpu.memory_space<vmem>>, %arg4: memref<128x8xf32, #tpu.memory_space<vmem>>, %arg5: memref<1x8xf32, #tpu.memory_space<vmem>>, %arg6: memref<4x2x128xf32, #tpu.memory_space<vmem>>, %arg7: memref<4x2x8xf32, #tpu.memory_space<vmem>>) attributes {dimension_semantics = [#tpu.dimension_semantics<arbitrary>], iteration_bounds = array<i64: 1>, scalar_prefetch = 0 : i64, scratch_operands = 0 : i64, tpu.core_type = #tpu.core_type<tc>, window_params = [{pipeline_mode = #tpu.pipeline_mode<synchronous>, transform_indices = @transform_0, window_bounds = array<i64: 2, 1024>}, {pipeline_mode = #tpu.pipeline_mode<synchronous>, transform_indices = @transform_1, window_bounds = array<i64: 1024, 128>}, {pipeline_mode = #tpu.pipeline_mode<synchronous>, transform_indices = @transform_2, window_bounds = array<i64: 1, 128>}, {pipeline_mode = #tpu.pipeline_mode<synchronous>, transform_indices = @transform_3, window_bounds = array<i64: 128, 8>}, {pipeline_mode = #tpu.pipeline_mode<synchronous>, transform_indices = @transform_4, window_bounds = array<i64: 1, 8>}, {pipeline_mode = #tpu.pipeline_mode<synchronous>, transform_indices = @transform_5, window_bounds = array<i64: 4, 2, 128>}, {pipeline_mode = #tpu.pipeline_mode<synchronous>, transform_indices = @transform_6, window_bounds = array<i64: 4, 2, 8>}]} {
    %c0 = arith.constant 0 : index
    %c0_0 = arith.constant 0 : index
    %0 = vector.load %arg1[%c0, %c0_0] : memref<2x1024xf32, #tpu.memory_space<vmem>>, vector<2x1024xf32>
    %c0_1 = arith.constant 0 : index
    %c0_2 = arith.constant 0 : index
    %1 = vector.load %arg2[%c0_1, %c0_2] : memref<1024x128xf32, #tpu.memory_space<vmem>>, vector<1024x128xf32>
    %cst = arith.constant dense<0.000000e+00> : vector<2x128xf32>
    %2 = tpu.matmul %0, %1, %cst {dimension_numbers = #tpu.dot_dimension_numbers<[1], [0], [0], [1], [0, 0, 1, 1], [], []>} : vector<2x1024xf32>, vector<1024x128xf32>, vector<2x128xf32> -> vector<2x128xf32>
    %c0_3 = arith.constant 0 : index
    %c0_4 = arith.constant 0 : index
    %3 = vector.load %arg3[%c0_3, %c0_4] : memref<1x128xf32, #tpu.memory_space<vmem>>, vector<1x128xf32>
    %4 = vector.broadcast %3 : vector<1x128xf32> to vector<2x128xf32>
    %5 = arith.addf %2, %4 : vector<2x128xf32>
    %cst_5 = arith.constant 0.000000e+00 : f32
    %6 = vector.broadcast %cst_5 : f32 to vector<2x128xf32>
    %7 = arith.maximumf %5, %6 : vector<2x128xf32>
    %c0_6 = arith.constant 0 : index
    %c0_7 = arith.constant 0 : index
    %c0_8 = arith.constant 0 : index
    %8 = vector.load %arg6[%c0_6, %c0_7, %c0_8] : memref<4x2x128xf32, #tpu.memory_space<vmem>>, vector<1x2x128xf32>
    %9 = vector.shape_cast %8 : vector<1x2x128xf32> to vector<2x128xf32>
    %cst_9 = arith.constant 5.000000e-01 : f32
    %10 = vector.broadcast %cst_9 : f32 to vector<2x128xf32>
    %11 = arith.cmpf oge, %9, %10 : vector<2x128xf32>
    %cst_10 = arith.constant 2.000000e+00 : f32
    %12 = vector.broadcast %cst_10 : f32 to vector<2x128xf32>
    %13 = arith.mulf %7, %12 : vector<2x128xf32>
    %cst_11 = arith.constant 0.000000e+00 : f32
    %14 = vector.broadcast %cst_11 : f32 to vector<2x128xf32>
    %15 = arith.select %11, %13, %14 : vector<2x128xi1>, vector<2x128xf32>
    %c0_12 = arith.constant 0 : index
    %c0_13 = arith.constant 0 : index
    %16 = vector.load %arg4[%c0_12, %c0_13] : memref<128x8xf32, #tpu.memory_space<vmem>>, vector<128x8xf32>
    %cst_14 = arith.constant dense<0.000000e+00> : vector<2x8xf32>
    %17 = tpu.matmul %15, %16, %cst_14 {dimension_numbers = #tpu.dot_dimension_numbers<[1], [0], [0], [1], [0, 0, 1, 1], [], []>} : vector<2x128xf32>, vector<128x8xf32>, vector<2x8xf32> -> vector<2x8xf32>
    %c0_15 = arith.constant 0 : index
    %c0_16 = arith.constant 0 : index
    %18 = vector.load %arg5[%c0_15, %c0_16] : memref<1x8xf32, #tpu.memory_space<vmem>>, vector<1x8xf32>
    %19 = vector.broadcast %18 : vector<1x8xf32> to vector<2x8xf32>
    %20 = arith.addf %17, %19 : vector<2x8xf32>
    %c0_17 = arith.constant 0 : index
    %c0_18 = arith.constant 0 : index
    %c0_19 = arith.constant 0 : index
    %21 = vector.load %arg7[%c0_17, %c0_18, %c0_19] : memref<4x2x8xf32, #tpu.memory_space<vmem>>, vector<1x2x8xf32>
    %22 = vector.shape_cast %21 : vector<1x2x8xf32> to vector<2x8xf32>
    %23 = vector.shape_cast %20 : vector<2x8xf32> to vector<1x2x8xf32>
    tpu.vector_store %arg7[%c0_17, %c0_18, %c0_19], %23 {strides = array<i32>} : memref<4x2x8xf32, #tpu.memory_space<vmem>>, vector<1x2x8xf32>,
    %c1 = arith.constant 1 : index
    %c0_20 = arith.constant 0 : index
    %c0_21 = arith.constant 0 : index
    %24 = vector.load %arg6[%c1, %c0_20, %c0_21] : memref<4x2x128xf32, #tpu.memory_space<vmem>>, vector<1x2x128xf32>
    %25 = vector.shape_cast %24 : vector<1x2x128xf32> to vector<2x128xf32>
    %cst_22 = arith.constant 5.000000e-01 : f32
    %26 = vector.broadcast %cst_22 : f32 to vector<2x128xf32>
    %27 = arith.cmpf oge, %25, %26 : vector<2x128xf32>
    %cst_23 = arith.constant 2.000000e+00 : f32
    %28 = vector.broadcast %cst_23 : f32 to vector<2x128xf32>
    %29 = arith.mulf %7, %28 : vector<2x128xf32>
    %cst_24 = arith.constant 0.000000e+00 : f32
    %30 = vector.broadcast %cst_24 : f32 to vector<2x128xf32>
    %31 = arith.select %27, %29, %30 : vector<2x128xi1>, vector<2x128xf32>
    %c0_25 = arith.constant 0 : index
    %c0_26 = arith.constant 0 : index
    %32 = vector.load %arg4[%c0_25, %c0_26] : memref<128x8xf32, #tpu.memory_space<vmem>>, vector<128x8xf32>
    %cst_27 = arith.constant dense<0.000000e+00> : vector<2x8xf32>
    %33 = tpu.matmul %31, %32, %cst_27 {dimension_numbers = #tpu.dot_dimension_numbers<[1], [0], [0], [1], [0, 0, 1, 1], [], []>} : vector<2x128xf32>, vector<128x8xf32>, vector<2x8xf32> -> vector<2x8xf32>
    %c0_28 = arith.constant 0 : index
    %c0_29 = arith.constant 0 : index
    %34 = vector.load %arg5[%c0_28, %c0_29] : memref<1x8xf32, #tpu.memory_space<vmem>>, vector<1x8xf32>
    %35 = vector.broadcast %34 : vector<1x8xf32> to vector<2x8xf32>
    %36 = arith.addf %33, %35 : vector<2x8xf32>
    %c1_30 = arith.constant 1 : index
    %c0_31 = arith.constant 0 : index
    %c0_32 = arith.constant 0 : index
    %37 = vector.load %arg7[%c1_30, %c0_31, %c0_32] : memref<4x2x8xf32, #tpu.memory_space<vmem>>, vector<1x2x8xf32>
    %38 = vector.shape_cast %37 : vector<1x2x8xf32> to vector<2x8xf32>
    %39 = vector.shape_cast %36 : vector<2x8xf32> to vector<1x2x8xf32>
    tpu.vector_store %arg7[%c1_30, %c0_31, %c0_32], %39 {strides = array<i32>} : memref<4x2x8xf32, #tpu.memory_space<vmem>>, vector<1x2x8xf32>,
    %c2 = arith.constant 2 : index
    %c0_33 = arith.constant 0 : index
    %c0_34 = arith.constant 0 : index
    %40 = vector.load %arg6[%c2, %c0_33, %c0_34] : memref<4x2x128xf32, #tpu.memory_space<vmem>>, vector<1x2x128xf32>
    %41 = vector.shape_cast %40 : vector<1x2x128xf32> to vector<2x128xf32>
    %cst_35 = arith.constant 5.000000e-01 : f32
    %42 = vector.broadcast %cst_35 : f32 to vector<2x128xf32>
    %43 = arith.cmpf oge, %41, %42 : vector<2x128xf32>
    %cst_36 = arith.constant 2.000000e+00 : f32
    %44 = vector.broadcast %cst_36 : f32 to vector<2x128xf32>
    %45 = arith.mulf %7, %44 : vector<2x128xf32>
    %cst_37 = arith.constant 0.000000e+00 : f32
    %46 = vector.broadcast %cst_37 : f32 to vector<2x128xf32>
    %47 = arith.select %43, %45, %46 : vector<2x128xi1>, vector<2x128xf32>
    %c0_38 = arith.constant 0 : index
    %c0_39 = arith.constant 0 : index
    %48 = vector.load %arg4[%c0_38, %c0_39] : memref<128x8xf32, #tpu.memory_space<vmem>>, vector<128x8xf32>
    %cst_40 = arith.constant dense<0.000000e+00> : vector<2x8xf32>
    %49 = tpu.matmul %47, %48, %cst_40 {dimension_numbers = #tpu.dot_dimension_numbers<[1], [0], [0], [1], [0, 0, 1, 1], [], []>} : vector<2x128xf32>, vector<128x8xf32>, vector<2x8xf32> -> vector<2x8xf32>
    %c0_41 = arith.constant 0 : index
    %c0_42 = arith.constant 0 : index
    %50 = vector.load %arg5[%c0_41, %c0_42] : memref<1x8xf32, #tpu.memory_space<vmem>>, vector<1x8xf32>
    %51 = vector.broadcast %50 : vector<1x8xf32> to vector<2x8xf32>
    %52 = arith.addf %49, %51 : vector<2x8xf32>
    %c2_43 = arith.constant 2 : index
    %c0_44 = arith.constant 0 : index
    %c0_45 = arith.constant 0 : index
    %53 = vector.load %arg7[%c2_43, %c0_44, %c0_45] : memref<4x2x8xf32, #tpu.memory_space<vmem>>, vector<1x2x8xf32>
    %54 = vector.shape_cast %53 : vector<1x2x8xf32> to vector<2x8xf32>
    %55 = vector.shape_cast %52 : vector<2x8xf32> to vector<1x2x8xf32>
    tpu.vector_store %arg7[%c2_43, %c0_44, %c0_45], %55 {strides = array<i32>} : memref<4x2x8xf32, #tpu.memory_space<vmem>>, vector<1x2x8xf32>,
    %c3 = arith.constant 3 : index
    %c0_46 = arith.constant 0 : index
    %c0_47 = arith.constant 0 : index
    %56 = vector.load %arg6[%c3, %c0_46, %c0_47] : memref<4x2x128xf32, #tpu.memory_space<vmem>>, vector<1x2x128xf32>
    %57 = vector.shape_cast %56 : vector<1x2x128xf32> to vector<2x128xf32>
    %cst_48 = arith.constant 5.000000e-01 : f32
    %58 = vector.broadcast %cst_48 : f32 to vector<2x128xf32>
    %59 = arith.cmpf oge, %57, %58 : vector<2x128xf32>
    %cst_49 = arith.constant 2.000000e+00 : f32
    %60 = vector.broadcast %cst_49 : f32 to vector<2x128xf32>
    %61 = arith.mulf %7, %60 : vector<2x128xf32>
    %cst_50 = arith.constant 0.000000e+00 : f32
    %62 = vector.broadcast %cst_50 : f32 to vector<2x128xf32>
    %63 = arith.select %59, %61, %62 : vector<2x128xi1>, vector<2x128xf32>
    %c0_51 = arith.constant 0 : index
    %c0_52 = arith.constant 0 : index
    %64 = vector.load %arg4[%c0_51, %c0_52] : memref<128x8xf32, #tpu.memory_space<vmem>>, vector<128x8xf32>
    %cst_53 = arith.constant dense<0.000000e+00> : vector<2x8xf32>
    %65 = tpu.matmul %63, %64, %cst_53 {dimension_numbers = #tpu.dot_dimension_numbers<[1], [0], [0], [1], [0, 0, 1, 1], [], []>} : vector<2x128xf32>, vector<128x8xf32>, vector<2x8xf32> -> vector<2x8xf32>
    %c0_54 = arith.constant 0 : index
    %c0_55 = arith.constant 0 : index
    %66 = vector.load %arg5[%c0_54, %c0_55] : memref<1x8xf32, #tpu.memory_space<vmem>>, vector<1x8xf32>
    %67 = vector.broadcast %66 : vector<1x8xf32> to vector<2x8xf32>
    %68 = arith.addf %65, %67 : vector<2x8xf32>
    %c3_56 = arith.constant 3 : index
    %c0_57 = arith.constant 0 : index
    %c0_58 = arith.constant 0 : index
    %69 = vector.load %arg7[%c3_56, %c0_57, %c0_58] : memref<4x2x8xf32, #tpu.memory_space<vmem>>, vector<1x2x8xf32>
    %70 = vector.shape_cast %69 : vector<1x2x8xf32> to vector<2x8xf32>
    %71 = vector.shape_cast %68 : vector<2x8xf32> to vector<1x2x8xf32>
    tpu.vector_store %arg7[%c3_56, %c0_57, %c0_58], %71 {strides = array<i32>} : memref<4x2x8xf32, #tpu.memory_space<vmem>>, vector<1x2x8xf32>,
    return
  }
  func.func @transform_0(%arg0: i32) -> (i32, i32) {
    %c0_i32 = arith.constant 0 : i32
    %c0_i32_0 = arith.constant 0 : i32
    %c0_i32_1 = arith.constant 0 : i32
    return %c0_i32, %c0_i32_0 : i32, i32
  }
  func.func @transform_1(%arg0: i32) -> (i32, i32) {
    %c0_i32 = arith.constant 0 : i32
    %c0_i32_0 = arith.constant 0 : i32
    %c0_i32_1 = arith.constant 0 : i32
    return %c0_i32, %c0_i32_0 : i32, i32
  }
  func.func @transform_2(%arg0: i32) -> (i32, i32) {
    %c0_i32 = arith.constant 0 : i32
    %c0_i32_0 = arith.constant 0 : i32
    %c0_i32_1 = arith.constant 0 : i32
    return %c0_i32, %c0_i32_0 : i32, i32
  }
  func.func @transform_3(%arg0: i32) -> (i32, i32) {
    %c0_i32 = arith.constant 0 : i32
    %c0_i32_0 = arith.constant 0 : i32
    %c0_i32_1 = arith.constant 0 : i32
    return %c0_i32, %c0_i32_0 : i32, i32
  }
  func.func @transform_4(%arg0: i32) -> (i32, i32) {
    %c0_i32 = arith.constant 0 : i32
    %c0_i32_0 = arith.constant 0 : i32
    %c0_i32_1 = arith.constant 0 : i32
    return %c0_i32, %c0_i32_0 : i32, i32
  }
  func.func @transform_5(%arg0: i32) -> (i32, i32, i32) {
    %c0_i32 = arith.constant 0 : i32
    %c0_i32_0 = arith.constant 0 : i32
    %c0_i32_1 = arith.constant 0 : i32
    %c0_i32_2 = arith.constant 0 : i32
    return %c0_i32, %c0_i32_0, %c0_i32_1 : i32, i32, i32
  }
  func.func @transform_6(%arg0: i32) -> (i32, i32, i32) {
    %c0_i32 = arith.constant 0 : i32
    %c0_i32_0 = arith.constant 0 : i32
    %c0_i32_1 = arith.constant 0 : i32
    %c0_i32_2 = arith.constant 0 : i32
    return %c0_i32, %c0_i32_0, %c0_i32_1 : i32, i32, i32
  }
}

</mosaic_0001>

<bundles_post_ra>
// kernel: tpu_custom_call.1
= control target key start
LH: loop header
LB: loop body
LE: loop exit
PB: predicated region body
PF: predicated region fallthrough
CT: control target
= control target key end

     0   :  { %11 = vsyncpa [#allocation3], 0  ;;  %s1797_s0 = inlined_call_operand.vmem [shape: f32[2,1024], index: 0, kind: input, shape index: {}]   ;;  %s1798_s1 = inlined_call_operand.hbm [shape: f32[1024,128], index: 1, kind: input, shape index: {}]   ;;  %s1799_s2 = inlined_call_operand.vmem [shape: f32[1,128], index: 2, kind: input, shape index: {}]   ;;  %s1800_s3 = inlined_call_operand.vmem [shape: f32[128,8], index: 3, kind: input, shape index: {}]   ;;  %s1801_s4 = inlined_call_operand.vmem [shape: f32[1,8], index: 4, kind: input, shape index: {}]   ;;  %s1802_s5 = inlined_call_operand.vmem [shape: f32[4,2,128], index: 5, kind: input, shape index: {}]   ;;  %s1803_s6 = inlined_call_operand.hbm [shape: f32[4,2,8], index: 6, kind: output, shape index: {}]  }
   0x1   :  { %12 = vsyncpa [#allocation4], 0  ;;  %s1557_s21 = smov [#allocation2]   ;;  %s1509_s25 = scalar_lea.hbm %s1798_s1, 16384 }
   0x2   :  { %s20_s22 = sshll.u32 %s1557_s21, 4  ;;  %p1510_p0 = scmp.ne.s32.totalorder %s1798_s1, %s1509_s25  ;;  %s21_s22 = int_to_ptr.vmem [resolvable:$true] %s20_s22 }
   0x3   :  { %p1513_p1 = scmp.lt.u32.totalorder %s1509_s25, %s1798_s1 }
   0x5   :  { %p1515_p2 = pnand %p1513_p1, %p1510_p0 }
   0x7   :  { %1518 = shalt.err (!%p1515_p2)
}
   0x8   :  { %s1519_s30 = scalar_lea.vmem %s21_s22, 16384  ;;  %p1524_p4 = scmp.lt.s32.totalorder %s21_s22, %s21_s22 }
   0x9   :  { %p1520_p3 = scmp.ne.s32.totalorder %s21_s22, %s1519_s30  ;;  %p1525_p5 = scmp.lt.s32.totalorder %s1519_s30, %s1519_s30 }
   0xb   :  { %p1526_p6 = por %p1525_p5, %p1524_p4 }
   0xd   :  { %p1527_p7 = pnand %p1526_p6, %p1520_p3 }
   0xf   :  { %1530 = shalt.err (!%p1527_p7)
}
  0x10   :  { %s1558_s7 = smov 128   ;;  %s1559_s8 = smov 8  }
  0x11   :  { %26 = dma.hbm_to_vmem [thread:$0]  %s1798_s1, 16384, %s21_s22, [#allocation3], %s1558_s7, %s1558_s7, %s1559_s8  }
  0x12   :  { %1553 = dma.done.wait [#allocation3], 16384  }
  0x13   :  { %1554 = vsyncadd [#allocation3], 4294950912  ;;  %v56_v0 = vld [vmem:[#allocation2 + $0x80] sm:$0xff]  ;;  %v57_v1 = vld [vmem:[#allocation2 + $0x88] sm:$0xff]  ;;  %v1560_v47 = vmov 1983009808   ;;  %v181_v49 = vlaneseq }
  0x14   :  { %v40_v2 = vld [vmem:[#allocation2] sm:$0xff]  ;;  %v1273_v3 = vpack.c.bf16 %v57_v1, %v56_v0  ;;  %v41_v4 = vld [vmem:[#allocation2 + $0x8] sm:$0xff]  ;;  %v58_v11 = vld [vmem:[#allocation2 + $0x90] sm:$0xff]  ;;  %v179_v48 = vunpack.c.l.s4 %v1560_v47  ;;  %vm1562_vm0 = vmmov 0   ;;  %vm597_vm5 = vcmask 58368  }
  0x15   :  { %v88_v5 = vld [vmem:[#allocation2 + $0x180] sm:$0xff]  ;;  %v89_v6 = vld [vmem:[#allocation2 + $0x188] sm:$0xff]  ;;  %v1275_v7 = vpack.c.bf16 %v41_v4, %v40_v2  ;;  %v59_v13 = vld [vmem:[#allocation2 + $0x98] sm:$0xff]  ;;  %v182_v0 = vshrl.u32 %v181_v49, 7 }
  0x16   :  { %v1305_v8 = vpack.c.bf16 %v89_v6, %v88_v5  ;;  %v72_v9 = vld [vmem:[#allocation2 + $0x100] sm:$0xff]  ;;  %v73_v10 = vld [vmem:[#allocation2 + $0x108] sm:$0xff]  ;;  %1274 = vmatprep.subr.bf16.mxu0 %v1273_v3  ;;  %v42_v14 = vld [vmem:[#allocation2 + $0x10] sm:$0xff]  ;;  %v1277_v16 = vpack.c.bf16 %v59_v13, %v58_v11  ;;  %v180_v63 = vunpack.c.0.s8 %v179_v48 }
  0x17   :  { %v1307_v12 = vpack.c.bf16 %v73_v10, %v72_v9  ;;  %v43_v15 = vld [vmem:[#allocation2 + $0x18] sm:$0xff]  ;;  %1276 = vmatpush3.bf16.msra.mxu0 %v1275_v7  ;;  %v90_v18 = vld [vmem:[#allocation2 + $0x190] sm:$0xff]  ;;  %v60_v23 = vld [vmem:[#allocation2 + $0xa0] sm:$0xff] }
  0x18   :  { %1306 = vmatprep.subr.bf16.mxu1 %v1305_v8  ;;  %v1279_v17 = vpack.c.bf16 %v43_v15, %v42_v14  ;;  %v91_v19 = vld [vmem:[#allocation2 + $0x198] sm:$0xff]  ;;  %v74_v20 = vld [vmem:[#allocation2 + $0x110] sm:$0xff]  ;;  %v61_v24 = vld [vmem:[#allocation2 + $0xa8] sm:$0xff]  ;;  %1278 = vmatprep.subr.bf16.mxu0 %v1277_v16  ;;  %v1614_v13 = vsub.s32 %v180_v63, %v182_v0 }
  0x19   :  { %1308 = vmatpush3.bf16.msra.mxu1 %v1307_v12  ;;  %v1309_v21 = vpack.c.bf16 %v91_v19, %v90_v18  ;;  %v75_v22 = vld [vmem:[#allocation2 + $0x118] sm:$0xff]  ;;  %v1281_v26 = vpack.c.bf16 %v61_v24, %v60_v23  ;;  %v44_v27 = vld [vmem:[#allocation2 + $0x20] sm:$0xff]  ;;  %v45_v28 = vld [vmem:[#allocation2 + $0x28] sm:$0xff] }
  0x1a   :  { %v1311_v25 = vpack.c.bf16 %v75_v22, %v74_v20  ;;  %v92_v29 = vld [vmem:[#allocation2 + $0x1a0] sm:$0xff]  ;;  %v93_v30 = vld [vmem:[#allocation2 + $0x1a8] sm:$0xff]  ;;  %v1283_v33 = vpack.c.bf16 %v45_v28, %v44_v27  ;;  %v62_v35 = vld [vmem:[#allocation2 + $0xb0] sm:$0xff] }
  0x1b   :  { %1310 = vmatprep.subr.bf16.mxu1 %v1309_v21  ;;  %v76_v31 = vld [vmem:[#allocation2 + $0x120] sm:$0xff]  ;;  %v77_v32 = vld [vmem:[#allocation2 + $0x128] sm:$0xff]  ;;  %1280 = vmatpush3.bf16.msra.mxu0 %v1279_v17  ;;  %v1313_v34 = vpack.c.bf16 %v93_v30, %v92_v29  ;;  %v63_v36 = vld [vmem:[#allocation2 + $0xb8] sm:$0xff] }
  0x1c   :  { %v46_v37 = vld [vmem:[#allocation2 + $0x30] sm:$0xff]  ;;  %1282 = vmatprep.subr.bf16.mxu0 %v1281_v26  ;;  %v1315_v38 = vpack.c.bf16 %v77_v32, %v76_v31  ;;  %v1285_v39 = vpack.c.bf16 %v63_v36, %v62_v35  ;;  %v47_v40 = vld [vmem:[#allocation2 + $0x38] sm:$0xff]  ;;  %v64_v46 = vld [vmem:[#allocation2 + $0xc0] sm:$0xff] }
  0x1d   :  { %1312 = vmatpush3.bf16.msra.mxu1 %v1311_v25  ;;  %v94_v41 = vld [vmem:[#allocation2 + $0x1b0] sm:$0xff]  ;;  %v95_v42 = vld [vmem:[#allocation2 + $0x1b8] sm:$0xff]  ;;  %v65_v50 = vld [vmem:[#allocation2 + $0xc8] sm:$0xff]  ;;  %v1287_v51 = vpack.c.bf16 %v47_v40, %v46_v37 }
  0x1e   :  { %1314 = vmatprep.subr.bf16.mxu1 %v1313_v34  ;;  %v1317_v43 = vpack.c.bf16 %v95_v42, %v94_v41  ;;  %v78_v44 = vld [vmem:[#allocation2 + $0x130] sm:$0xff]  ;;  %v79_v45 = vld [vmem:[#allocation2 + $0x138] sm:$0xff]  ;;  %v96_v52 = vld [vmem:[#allocation2 + $0x1c0] sm:$0xff]  ;;  %v1289_v55 = vpack.c.bf16 %v65_v50, %v64_v46 }
  0x1f   :  { %1284 = vmatpush3.bf16.msra.mxu0 %v1283_v33  ;;  %v97_v53 = vld [vmem:[#allocation2 + $0x1c8] sm:$0xff]  ;;  %v1319_v54 = vpack.c.bf16 %v79_v45, %v78_v44  ;;  %v48_v56 = vld [vmem:[#allocation2 + $0x40] sm:$0xff]  ;;  %v66_v61 = vld [vmem:[#allocation2 + $0xd0] sm:$0xff] }
  0x20   :  { %1286 = vmatprep.subr.bf16.mxu0 %v1285_v39  ;;  %v49_v57 = vld [vmem:[#allocation2 + $0x48] sm:$0xff]  ;;  %v80_v58 = vld [vmem:[#allocation2 + $0x140] sm:$0xff]  ;;  %v1321_v59 = vpack.c.bf16 %v97_v53, %v96_v52  ;;  %v67_v62 = vld [vmem:[#allocation2 + $0xd8] sm:$0xff] }
  0x21   :  { %1316 = vmatpush3.bf16.msra.mxu1 %v1315_v38  ;;  %v81_v60 = vld [vmem:[#allocation2 + $0x148] sm:$0xff]  ;;  %v98_v1 = vld [vmem:[#allocation2 + $0x1d0] sm:$0xff]  ;;  %v99_v2 = vld [vmem:[#allocation2 + $0x1d8] sm:$0xff]  ;;  %v1291_v3 = vpack.c.bf16 %v49_v57, %v48_v56  ;;  %v1293_v5 = vpack.c.bf16 %v67_v62, %v66_v61 }
  0x22   :  { %1318 = vmatprep.subr.bf16.mxu1 %v1317_v43  ;;  %v1323_v4 = vpack.c.bf16 %v81_v60, %v80_v58  ;;  %v50_v6 = vld [vmem:[#allocation2 + $0x50] sm:$0xff]  ;;  %v51_v7 = vld [vmem:[#allocation2 + $0x58] sm:$0xff]  ;;  %v1325_v9 = vpack.c.bf16 %v99_v2, %v98_v1  ;;  %v68_v11 = vld [vmem:[#allocation2 + $0xe0] sm:$0xff] }
  0x23   :  { %1288 = vmatpush3.bf16.msra.mxu0 %v1287_v51  ;;  %v82_v8 = vld [vmem:[#allocation2 + $0x150] sm:$0xff]  ;;  %v83_v10 = vld [vmem:[#allocation2 + $0x158] sm:$0xff]  ;;  %v69_v12 = vld [vmem:[#allocation2 + $0xe8] sm:$0xff]  ;;  %v1295_v16 = vpack.c.bf16 %v51_v7, %v50_v6 }
  0x24   :  { %1290 = vmatprep.subr.bf16.mxu0 %v1289_v55  ;;  %v100_v14 = vld [vmem:[#allocation2 + $0x1e0] sm:$0xff]  ;;  %v101_v15 = vld [vmem:[#allocation2 + $0x1e8] sm:$0xff]  ;;  %v1327_v18 = vpack.c.bf16 %v83_v10, %v82_v8  ;;  %v1297_v19 = vpack.c.bf16 %v69_v12, %v68_v11  ;;  %v70_v25 = vld [vmem:[#allocation2 + $0xf0] sm:$0xff] }
  0x25   :  { %1320 = vmatpush3.bf16.msra.mxu1 %v1319_v54  ;;  %v52_v17 = vld [vmem:[#allocation2 + $0x60] sm:$0xff]  ;;  %v53_v20 = vld [vmem:[#allocation2 + $0x68] sm:$0xff]  ;;  %v1329_v23 = vpack.c.bf16 %v101_v15, %v100_v14  ;;  %v71_v26 = vld [vmem:[#allocation2 + $0xf8] sm:$0xff] }
  0x26   :  { %1322 = vmatprep.subr.bf16.mxu1 %v1321_v59  ;;  %v84_v21 = vld [vmem:[#allocation2 + $0x160] sm:$0xff]  ;;  %v85_v24 = vld [vmem:[#allocation2 + $0x168] sm:$0xff]  ;;  %v102_v29 = vld [vmem:[#allocation2 + $0x1f0] sm:$0xff]  ;;  %v1299_v31 = vpack.c.bf16 %v53_v20, %v52_v17  ;;  %v1301_v35 = vpack.c.bf16 %v71_v26, %v70_v25 }
  0x27   :  { %1292 = vmatpush3.bf16.msra.mxu0 %v1291_v3  ;;  %v38_v22 = vld [vmem:[%s1797_s0] sm:$0xff]  ;;  %v103_v30 = vld [vmem:[#allocation2 + $0x1f8] sm:$0xff]  ;;  %v1331_v34 = vpack.c.bf16 %v85_v24, %v84_v21  ;;  %v54_v36 = vld [vmem:[#allocation2 + $0x70] sm:$0xff] }
  0x28   :  { %1294 = vmatprep.subr.bf16.mxu0 %v1293_v5  ;;  %v184_v27 = vrot.slane %v38_v22, %v1614_v13  ;;  %v177_v28 = vcombine.high %v38_v22, %v38_v22  ;;  %v55_v37 = vld [vmem:[#allocation2 + $0x78] sm:$0xff]  ;;  %v86_v38 = vld [vmem:[#allocation2 + $0x170] sm:$0xff]  ;;  %v1333_v39 = vpack.c.bf16 %v103_v30, %v102_v29  ;;  %v120_v41 = vld [vmem:[#allocation2 + $0x280] sm:$0xff] }
  0x29   :  { %1324 = vmatpush3.bf16.msra.mxu1 %v1323_v4  ;;  %v87_v40 = vld [vmem:[#allocation2 + $0x178] sm:$0xff]  ;;  %v121_v42 = vld [vmem:[#allocation2 + $0x288] sm:$0xff]  ;;  %v152_v44 = vld [vmem:[#allocation2 + $0x380] sm:$0xff]  ;;  %v1303_v46 = vpack.c.bf16 %v55_v37, %v54_v36 }
  0x2a   :  { %1326 = vmatprep.subr.bf16.mxu1 %v1325_v9  ;;  %v192_v32 = vcombine.high %v184_v27, %v184_v27  ;;  %v191_v33 = vrot.slane %v177_v28, %v1614_v13  ;;  %v153_v45 = vld [vmem:[#allocation2 + $0x388] sm:$0xff]  ;;  %v1335_v47 = vpack.c.bf16 %v87_v40, %v86_v38  ;;  %v1337_v48 = vpack.c.bf16 %v121_v42, %v120_v41  ;;  %v104_v49 = vld [vmem:[#allocation2 + $0x200] sm:$0xff]  ;;  %v122_v54 = vld [vmem:[#allocation2 + $0x290] sm:$0xff] }
  0x2b   :  { %1296 = vmatpush3.bf16.msra.mxu0 %v1295_v16  ;;  %v105_v50 = vld [vmem:[#allocation2 + $0x208] sm:$0xff]  ;;  %v136_v51 = vld [vmem:[#allocation2 + $0x300] sm:$0xff]  ;;  %v1369_v52 = vpack.c.bf16 %v153_v45, %v152_v44  ;;  %v123_v55 = vld [vmem:[#allocation2 + $0x298] sm:$0xff] }
  0x2c   :  { %1298 = vmatprep.subr.bf16.mxu0 %v1297_v19  ;;  %283 = vmatprep.mubr.f32.mxu0 %v192_v32  ;;  %v193_v43 = vcombine.high %v191_v33, %v191_v33  ;;  %v137_v53 = vld [vmem:[#allocation2 + $0x308] sm:$0xff]  ;;  %v154_v56 = vld [vmem:[#allocation2 + $0x390] sm:$0xff]  ;;  %v155_v57 = vld [vmem:[#allocation2 + $0x398] sm:$0xff]  ;;  %v1339_v58 = vpack.c.bf16 %v105_v50, %v104_v49  ;;  %v1341_v60 = vpack.c.bf16 %v123_v55, %v122_v54 }
  0x2d   :  { %1328 = vmatpush3.bf16.msra.mxu1 %v1327_v18  ;;  %v1371_v59 = vpack.c.bf16 %v137_v53, %v136_v51  ;;  %v106_v61 = vld [vmem:[#allocation2 + $0x210] sm:$0xff]  ;;  %v107_v62 = vld [vmem:[#allocation2 + $0x218] sm:$0xff]  ;;  %v1373_v0 = vpack.c.bf16 %v155_v57, %v154_v56  ;;  %v124_v2 = vld [vmem:[#allocation2 + $0x2a0] sm:$0xff] }
  0x2e   :  { %1330 = vmatprep.subr.bf16.mxu1 %v1329_v23  ;;  %353 = vmatprep.mubr.f32.mxu1 %v193_v43  ;;  %v138_v63 = vld [vmem:[#allocation2 + $0x310] sm:$0xff]  ;;  %v139_v1 = vld [vmem:[#allocation2 + $0x318] sm:$0xff]  ;;  %v125_v3 = vld [vmem:[#allocation2 + $0x2a8] sm:$0xff]  ;;  %v1343_v6 = vpack.c.bf16 %v107_v62, %v106_v61 }
  0x2f   :  { %1300 = vmatpush3.bf16.msra.mxu0 %v1299_v31  ;;  %v156_v4 = vld [vmem:[#allocation2 + $0x3a0] sm:$0xff]  ;;  %v157_v5 = vld [vmem:[#allocation2 + $0x3a8] sm:$0xff]  ;;  %v1375_v7 = vpack.c.bf16 %v139_v1, %v138_v63  ;;  %v1345_v8 = vpack.c.bf16 %v125_v3, %v124_v2  ;;  %v126_v15 = vld [vmem:[#allocation2 + $0x2b0] sm:$0xff] }
  0x30   :  { %1302 = vmatprep.subr.bf16.mxu0 %v1301_v35  ;;  %v108_v9 = vld [vmem:[#allocation2 + $0x220] sm:$0xff]  ;;  %v109_v10 = vld [vmem:[#allocation2 + $0x228] sm:$0xff]  ;;  %v1377_v12 = vpack.c.bf16 %v157_v5, %v156_v4  ;;  %v127_v16 = vld [vmem:[#allocation2 + $0x2b8] sm:$0xff] }
  0x31   :  { %1332 = vmatpush3.bf16.msra.mxu1 %v1331_v34  ;;  %v140_v11 = vld [vmem:[#allocation2 + $0x320] sm:$0xff]  ;;  %v141_v14 = vld [vmem:[#allocation2 + $0x328] sm:$0xff]  ;;  %v158_v17 = vld [vmem:[#allocation2 + $0x3b0] sm:$0xff]  ;;  %v1347_v19 = vpack.c.bf16 %v109_v10, %v108_v9  ;;  %v1349_v21 = vpack.c.bf16 %v127_v16, %v126_v15 }
  0x32   :  { %1334 = vmatprep.subr.bf16.mxu1 %v1333_v39  ;;  %v159_v18 = vld [vmem:[#allocation2 + $0x3b8] sm:$0xff]  ;;  %v1379_v20 = vpack.c.bf16 %v141_v14, %v140_v11  ;;  %v110_v22 = vld [vmem:[#allocation2 + $0x230] sm:$0xff]  ;;  %v129_v28 = vld [vmem:[#allocation2 + $0x2c8] sm:$0xff] }
  0x33   :  { %1304 = vmatpush3.bf16.msra.mxu0 %v1303_v46  ;;  %v111_v23 = vld [vmem:[#allocation2 + $0x238] sm:$0xff]  ;;  %v142_v24 = vld [vmem:[#allocation2 + $0x330] sm:$0xff]  ;;  %v1381_v25 = vpack.c.bf16 %v159_v18, %v158_v17  ;;  %v160_v29 = vld [vmem:[#allocation2 + $0x3c0] sm:$0xff] }
  0x34   :  { %1338 = vmatprep.subr.bf16.mxu0 %v1337_v48  ;;  %v143_v26 = vld [vmem:[#allocation2 + $0x338] sm:$0xff]  ;;  %v161_v30 = vld [vmem:[#allocation2 + $0x3c8] sm:$0xff]  ;;  %v1351_v32 = vpack.c.bf16 %v111_v23, %v110_v22  ;;  %v112_v37 = vld [vmem:[#allocation2 + $0x240] sm:$0xff]  ;;  %v1561_v22 = vmov 0.0|0.0  }
  0x35   :  { %1336 = vmatpush3.bf16.msra.mxu1 %v1335_v47  ;;  %v39_v31 = vld [vmem:[%s1797_s0 + $0x8] sm:$0xff]  ;;  %v1383_v35 = vpack.c.bf16 %v143_v26, %v142_v24  ;;  %v144_v39 = vld [vmem:[#allocation2 + $0x340] sm:$0xff]  ;;  %v1385_v40 = vpack.c.bf16 %v161_v30, %v160_v29  ;;  %v130_v42 = vld [vmem:[#allocation2 + $0x2d0] sm:$0xff] }
  0x36   :  { %1370 = vmatprep.subr.bf16.mxu1 %v1369_v52  ;;  %284 = vmatmul.mubr.f32.vlgmr.msra.gmra.mrb[0].mxu0 %v184_v27  ;;  %v128_v27 = vld [vmem:[#allocation2 + $0x2c0] sm:$0xff]  ;;  %v194_v34 = vcombine.high %v39_v31, %v39_v31  ;;  %v113_v38 = vld [vmem:[#allocation2 + $0x248] sm:$0xff]  ;;  %v131_v43 = vld [vmem:[#allocation2 + $0x2d8] sm:$0xff] }
  0x37   :  { %1340 = vmatpush3.bf16.msra.mxu0 %v1339_v58  ;;  %v1353_v36 = vpack.c.bf16 %v129_v28, %v128_v27  ;;  %v145_v41 = vld [vmem:[#allocation2 + $0x348] sm:$0xff]  ;;  %v162_v46 = vld [vmem:[#allocation2 + $0x3d0] sm:$0xff]  ;;  %v163_v47 = vld [vmem:[#allocation2 + $0x3d8] sm:$0xff]  ;;  %v1355_v48 = vpack.c.bf16 %v113_v38, %v112_v37  ;;  %v1357_v51 = vpack.c.bf16 %v131_v43, %v130_v42 }
  0x38   :  { %354 = vmatmul.mubr.f32.vlgmr.msra.gmra.mrb[0].mxu1 %v191_v33  ;;  %1342 = vmatprep.subr.bf16.mxu0 %v1341_v60  ;;  %v1625_v33 = vrot.slane %v39_v31, %v1614_v13  ;;  %v208_v45 = vrot.slane %v194_v34, %v1614_v13  ;;  %v1387_v50 = vpack.c.bf16 %v145_v41, %v144_v39  ;;  %v114_v52 = vld [vmem:[#allocation2 + $0x250] sm:$0xff]  ;;  %v115_v53 = vld [vmem:[#allocation2 + $0x258] sm:$0xff]  ;;  %v132_v57 = vld [vmem:[#allocation2 + $0x2e0] sm:$0xff] }
  0x39   :  { %1372 = vmatpush3.bf16.msra.mxu1 %v1371_v59  ;;  %v146_v54 = vld [vmem:[#allocation2 + $0x350] sm:$0xff]  ;;  %v1389_v55 = vpack.c.bf16 %v163_v47, %v162_v46  ;;  %v147_v56 = vld [vmem:[#allocation2 + $0x358] sm:$0xff]  ;;  %v133_v58 = vld [vmem:[#allocation2 + $0x2e8] sm:$0xff]  ;;  %v1359_v60 = vpack.c.bf16 %v115_v53, %v114_v52 }
  0x3a   :  { %1374 = vmatprep.subr.bf16.mxu1 %v1373_v0  ;;  %v209_v44 = vcombine.high %v1625_v33, %v1625_v33  ;;  %v210_v49 = vcombine.high %v208_v45, %v208_v45  ;;  %v164_v13 = vld [vmem:[#allocation2 + $0x3e0] sm:$0xff]  ;;  %v165_v59 = vld [vmem:[#allocation2 + $0x3e8] sm:$0xff]  ;;  %v1391_v61 = vpack.c.bf16 %v147_v56, %v146_v54  ;;  %v1361_v62 = vpack.c.bf16 %v133_v58, %v132_v57  ;;  %v134_v4 = vld [vmem:[#allocation2 + $0x2f0] sm:$0xff] }
  0x3b   :  { %1344 = vmatpush3.bf16.msra.mxu0 %v1343_v6  ;;  %v116_v63 = vld [vmem:[#allocation2 + $0x260] sm:$0xff]  ;;  %v117_v0 = vld [vmem:[#allocation2 + $0x268] sm:$0xff]  ;;  %v1393_v2 = vpack.c.bf16 %v165_v59, %v164_v13  ;;  %v135_v5 = vld [vmem:[#allocation2 + $0x2f8] sm:$0xff] }
  0x3c   :  { %1346 = vmatprep.subr.bf16.mxu0 %v1345_v8  ;;  %423 = vmatprep.mubr.f32.mxu0 %v209_v44  ;;  %v148_v1 = vld [vmem:[#allocation2 + $0x360] sm:$0xff]  ;;  %v149_v3 = vld [vmem:[#allocation2 + $0x368] sm:$0xff]  ;;  %v166_v6 = vld [vmem:[#allocation2 + $0x3f0] sm:$0xff]  ;;  %v1363_v8 = vpack.c.bf16 %v117_v0, %v116_v63  ;;  %v1365_v10 = vpack.c.bf16 %v135_v5, %v134_v4  ;;  %v1563_v44 = vmov 0.0  }
  0x3d   :  { %1376 = vmatpush3.bf16.msra.mxu1 %v1375_v7  ;;  %493 = vmatprep.mubr.f32.mxu1 %v210_v49  ;;  %v167_v7 = vld [vmem:[#allocation2 + $0x3f8] sm:$0xff]  ;;  %v1395_v9 = vpack.c.bf16 %v149_v3, %v148_v1  ;;  %v118_v11 = vld [vmem:[#allocation2 + $0x270] sm:$0xff]  ;;  %v508_v26 = vld [vmem:[%s1800_s3 + $0x20] sm:$0xff] }
  0x3e   :  { %1378 = vmatprep.subr.bf16.mxu1 %v1377_v12  ;;  %v119_v12 = vld [vmem:[#allocation2 + $0x278] sm:$0xff]  ;;  %v1397_v14 = vpack.c.bf16 %v167_v7, %v166_v6  ;;  %v150_v15 = vld [vmem:[#allocation2 + $0x370] sm:$0xff]  ;;  %v509_v27 = vld [vmem:[%s1800_s3 + $0x28] sm:$0xff] }
  0x3f   :  { %1348 = vmatpush3.bf16.msra.mxu0 %v1347_v19  ;;  %v151_v16 = vld [vmem:[#allocation2 + $0x378] sm:$0xff]  ;;  %v1367_v17 = vpack.c.bf16 %v119_v12, %v118_v11  ;;  %v504_v19 = vld [vmem:[%s1800_s3] sm:$0xff]  ;;  %v1661_v28 = vpack.c.bf16 %v509_v27, %v508_v26  ;;  %v510_v29 = vld [vmem:[%s1800_s3 + $0x30] sm:$0xff] }
  0x40   :  { %1350 = vmatprep.subr.bf16.mxu0 %v1349_v21  ;;  %v1399_v18 = vpack.c.bf16 %v151_v16, %v150_v15  ;;  %v506_v21 = vld [vmem:[%s1800_s3 + $0x10] sm:$0xff]  ;;  %v507_v24 = vld [vmem:[%s1800_s3 + $0x18] sm:$0xff]  ;;  %v516_v38 = vld [vmem:[%s1800_s3 + $0x60] sm:$0xff] }
  0x41   :  { %1380 = vmatpush3.bf16.msra.mxu1 %v1379_v20  ;;  %v505_v20 = vld [vmem:[%s1800_s3 + $0x8] sm:$0xff]  ;;  %v511_v30 = vld [vmem:[%s1800_s3 + $0x38] sm:$0xff]  ;;  %v518_v41 = vld [vmem:[%s1800_s3 + $0x70] sm:$0xff] }
  0x42   :  { %1382 = vmatprep.subr.bf16.mxu1 %v1381_v25  ;;  %v1642_v23 = vpack.c.bf16 %v505_v20, %v504_v19  ;;  %v1649_v25 = vpack.c.bf16 %v507_v24, %v506_v21  ;;  %v1673_v31 = vpack.c.bf16 %v511_v30, %v510_v29  ;;  %v517_v39 = vld [vmem:[%s1800_s3 + $0x68] sm:$0xff]  ;;  %v519_v42 = vld [vmem:[%s1800_s3 + $0x78] sm:$0xff]  ;;  %v913_v46 = vld [vmem:[%s1799_s2] ss:$0 sm:$0xff] }
  0x43   :  { %1352 = vmatpush3.bf16.msra.mxu0 %v1351_v32  ;;  %v512_v32 = vld [vmem:[%s1800_s3 + $0x40] sm:$0xff]  ;;  %v1723_v43 = vpack.c.bf16 %v519_v42, %v518_v41 }
  0x44   :  { %1354 = vmatprep.subr.bf16.mxu0 %v1353_v36  ;;  %v515_v36 = vld [vmem:[%s1800_s3 + $0x58] sm:$0xff]  ;;  %v919_v1 = vld [vmem:[%s1802_s5 + $0x4] sm:$0x3]  ;;  %v914_v3 = vld [vmem:[%s1801_s4] ss:$0 sm:$0xff] }
  0x45   :  { %1384 = vmatpush3.bf16.msra.mxu1 %v1383_v35  ;;  %v514_v35 = vld [vmem:[%s1800_s3 + $0x50] sm:$0xff]  ;;  %vm700_vm3 = vcmp.ge.f32.partialorder %v919_v1, 0.5 }
  0x46   :  { %1386 = vmatprep.subr.bf16.mxu1 %v1385_v40  ;;  %v1699_v37 = vpack.c.bf16 %v515_v36, %v514_v35  ;;  %v1711_v40 = vpack.c.bf16 %v517_v39, %v516_v38 }
  0x47   :  { %1356 = vmatpush3.bf16.msra.mxu0 %v1355_v48 }
  0x48   :  { %1358 = vmatprep.subr.bf16.mxu0 %v1357_v51 }
  0x49   :  { %1388 = vmatpush3.bf16.msra.mxu1 %v1387_v50 }
  0x4a   :  { %1390 = vmatprep.subr.bf16.mxu1 %v1389_v55 }
  0x4b   :  { %1360 = vmatpush3.bf16.msra.mxu0 %v1359_v60 }
  0x4c   :  { %1362 = vmatprep.subr.bf16.mxu0 %v1361_v62  ;;  %v916_v62 = vld [vmem:[%s1802_s5 + $0x2] sm:$0x3] }
  0x4d   :  { %1392 = vmatpush3.bf16.msra.mxu1 %v1391_v61  ;;  %v500_v61 = vld [vmem:[%s1802_s5] sm:$0x3]  ;;  %vm601_vm2 = vcmp.ge.f32.partialorder %v916_v62, 0.5 }
  0x4e   :  { %1394 = vmatprep.subr.bf16.mxu1 %v1393_v2  ;;  %vm501_vm1 = vcmp.ge.f32.partialorder %v500_v61, 0.5  ;;  %v922_v2 = vld [vmem:[%s1802_s5 + $0x6] sm:$0x3]  ;;  %s1564_s5 = smov [#allocation5]  }
  0x4f   :  { %1364 = vmatpush3.bf16.msra.mxu0 %v1363_v8  ;;  %vm799_vm4 = vcmp.ge.f32.partialorder %v922_v2, 0.5  ;;  %s901_s29 = sshll.u32 %s1564_s5, 4  ;;  %s902_s29 = int_to_ptr.vmem [resolvable:$true] %s901_s29 }
  0x50   :  { %1366 = vmatprep.subr.bf16.mxu0 %v1365_v10  ;;  %s1531_s4 = scalar_lea.vmem %s902_s29, 128  ;;  %p1536_p9 = scmp.lt.s32.totalorder %s902_s29, %s902_s29 }
  0x51   :  { %1396 = vmatpush3.bf16.msra.mxu1 %v1395_v9  ;;  %p1532_p8 = scmp.ne.s32.totalorder %s902_s29, %s1531_s4  ;;  %p1537_p10 = scmp.lt.s32.totalorder %s1531_s4, %s1531_s4 }
  0x52   :  { %1398 = vmatprep.subr.bf16.mxu1 %v1397_v14 }
  0x53   :  { %1368 = vmatpush3.bf16.msra.mxu0 %v1367_v17  ;;  %p1538_p11 = por %p1537_p10, %p1536_p9 }
  0x54   :  { %1401 = vmatprep.subr.bf16.mxu0 %v1561_v22 }
  0x55   :  { %1400 = vmatpush3.bf16.msra.mxu1 %v1399_v18  ;;  %p1539_p12 = pnand %p1538_p11, %p1532_p8 }
  0x56   :  { %424 = vmatmul.mubr.f32.vlgmr.msra.gmra.mrb[2].mxu0 %v1625_v33  ;;  %1425 = vmatprep.subr.bf16.mxu1 %v1561_v22  ;;  %v513_v33 = vld [vmem:[%s1800_s3 + $0x48] sm:$0xff] }
  0x57   :  { %1403 = vmatpush3.bf16.msra.mxu0 %v1642_v23  ;;  %v1685_v34 = vpack.c.bf16 %v513_v33, %v512_v32  ;;  %1165 = vmatprep.mubr.msk.f32.mxu0 %vm1562_vm0, %v1563_v44 }
  0x58   :  { %494 = vmatmul.mubr.f32.vlgmr.msra.gmra.mrb[2].mxu1 %v208_v45  ;;  %1404 = vmatprep.subr.bf16.mxu0 %v1561_v22 }
  0x59   :  { %1427 = vmatpush3.bf16.msra.mxu1 %v1642_v23  ;;  %1200 = vmatprep.mubr.msk.f32.mxu1 %vm1562_vm0, %v1563_v44 }
  0x5a   :  { %1428 = vmatprep.subr.bf16.mxu1 %v1561_v22 }
  0x5b   :  { %1406 = vmatpush3.bf16.msra.mxu0 %v1649_v25 }
  0x5c   :  { %1407 = vmatprep.subr.bf16.mxu0 %v1561_v22 }
  0x5d   :  { %1430 = vmatpush3.bf16.msra.mxu1 %v1649_v25 }
  0x5e   :  { %1431 = vmatprep.subr.bf16.mxu1 %v1561_v22 }
  0x5f   :  { %1409 = vmatpush3.bf16.msra.mxu0 %v1661_v28 }
  0x60   :  { %1410 = vmatprep.subr.bf16.mxu0 %v1561_v22 }
  0x61   :  { %1433 = vmatpush3.bf16.msra.mxu1 %v1661_v28 }
  0x62   :  { %1434 = vmatprep.subr.bf16.mxu1 %v1561_v22 }
  0x63   :  { %1412 = vmatpush3.bf16.msra.mxu0 %v1673_v31 }
  0x64   :  { %1413 = vmatprep.subr.bf16.mxu0 %v1561_v22 }
  0x65   :  { %1436 = vmatpush3.bf16.msra.mxu1 %v1673_v31 }
  0x66   :  { %1437 = vmatprep.subr.bf16.mxu1 %v1561_v22 }
  0x67   :  { %1415 = vmatpush3.bf16.msra.mxu0 %v1685_v34 }
  0x68   :  { %1416 = vmatprep.subr.bf16.mxu0 %v1561_v22 }
  0x69   :  { %1439 = vmatpush3.bf16.msra.mxu1 %v1685_v34 }
  0x6a   :  { %1440 = vmatprep.subr.bf16.mxu1 %v1561_v22 }
  0x6b   :  { %1418 = vmatpush3.bf16.msra.mxu0 %v1699_v37 }
  0x6c   :  { %1419 = vmatprep.subr.bf16.mxu0 %v1561_v22 }
  0x6d   :  { %1442 = vmatpush3.bf16.msra.mxu1 %v1699_v37 }
  0x6e   :  { %1443 = vmatprep.subr.bf16.mxu1 %v1561_v22 }
  0x6f   :  { %1421 = vmatpush3.bf16.msra.mxu0 %v1711_v40 }
  0x70   :  { %1422 = vmatprep.subr.bf16.mxu0 %v1561_v22 }
  0x71   :  { %1445 = vmatpush3.bf16.msra.mxu1 %v1711_v40 }
  0x72   :  { %1446 = vmatprep.subr.bf16.mxu1 %v1561_v22 }
  0x73   :  { %1424 = vmatpush3.bf16.msra.mxu0 %v1723_v43 }
  0x74   :  { %1449 = vmatprep.subr.bf16.mxu0 %v1561_v22 }
  0x75   :  { %1448 = vmatpush3.bf16.msra.mxu1 %v1723_v43 }
  0x76   :  { %1473 = vmatprep.subr.bf16.mxu1 %v1561_v22 }
 0x109   :  { %v957_v45 = vpop.f32.mrb[0].mxu0 }
 0x10a   :  { %v958_v47 = vpop.f32.mrb[1].mxu0 }
 0x10b   :  { %v992_v48 = vpop.f32.mrb[0].mxu1  ;;  %v959_v49 = vadd.f32 %v958_v47, %v957_v45 }
 0x10c   :  { %v993_v50 = vpop.f32.mrb[1].mxu1 }
 0x10d   :  { %v994_v51 = vadd.f32 %v993_v50, %v992_v48  ;;  %v286_v52 = vadd.f32 %v959_v49, %v913_v46 }
 0x10f   :  { %v356_v53 = vadd.f32 %v994_v51, %v286_v52 }
 0x129   :  { %v1027_v54 = vpop.f32.mrb[2].mxu0 }
 0x12a   :  { %v1028_v55 = vpop.f32.mrb[3].mxu0 }
 0x12b   :  { %v1062_v56 = vpop.f32.mrb[2].mxu1  ;;  %v1029_v57 = vadd.f32 %v1028_v55, %v1027_v54 }
 0x12c   :  { %v1063_v58 = vpop.f32.mrb[3].mxu1 }
 0x12d   :  { %v1064_v13 = vadd.f32 %v1063_v58, %v1062_v56  ;;  %v426_v59 = vadd.f32 %v1029_v57, %v356_v53 }
 0x12f   :  { %v496_v60 = vadd.f32 %v1064_v13, %v426_v59 }
 0x131   :  { %v499_v63 = vmax.f32 %v496_v60, 0.0 }
 0x133   :  { %v502_v0 = vmul.f32 2.0, %v499_v63 }
 0x135   :  { %1166 = vmatmul.mubr.msk.f32.vlgmr.msra.gmra.mrb[4].mxu0 %vm501_vm1, %v502_v0  ;;  %1201 = vmatmul.mubr.msk.f32.vlgmr.msra.gmra.mrb[4].mxu1 %vm601_vm2, %v502_v0 }
 0x136   :  { %1451 = vmatpush3.bf16.msra.mxu0 %v1642_v23  ;;  %1475 = vmatpush3.bf16.msra.mxu1 %v1642_v23 }
 0x137   :  { %1452 = vmatprep.subr.bf16.mxu0 %v1561_v22  ;;  %1476 = vmatprep.subr.bf16.mxu1 %v1561_v22 }
 0x138   :  { %1235 = vmatprep.mubr.msk.f32.mxu0 %vm1562_vm0, %v1563_v44  ;;  %1270 = vmatprep.mubr.msk.f32.mxu1 %vm1562_vm0, %v1563_v44 }
 0x13a   :  { %1454 = vmatpush3.bf16.msra.mxu0 %v1649_v25  ;;  %1478 = vmatpush3.bf16.msra.mxu1 %v1649_v25 }
 0x13b   :  { %1455 = vmatprep.subr.bf16.mxu0 %v1561_v22  ;;  %1479 = vmatprep.subr.bf16.mxu1 %v1561_v22 }
 0x13e   :  { %1457 = vmatpush3.bf16.msra.mxu0 %v1661_v28  ;;  %1481 = vmatpush3.bf16.msra.mxu1 %v1661_v28 }
 0x13f   :  { %1458 = vmatprep.subr.bf16.mxu0 %v1561_v22  ;;  %1482 = vmatprep.subr.bf16.mxu1 %v1561_v22 }
 0x142   :  { %1460 = vmatpush3.bf16.msra.mxu0 %v1673_v31  ;;  %1484 = vmatpush3.bf16.msra.mxu1 %v1673_v31 }
 0x143   :  { %1461 = vmatprep.subr.bf16.mxu0 %v1561_v22  ;;  %1485 = vmatprep.subr.bf16.mxu1 %v1561_v22 }
 0x146   :  { %1463 = vmatpush3.bf16.msra.mxu0 %v1685_v34  ;;  %1487 = vmatpush3.bf16.msra.mxu1 %v1685_v34 }
 0x147   :  { %1464 = vmatprep.subr.bf16.mxu0 %v1561_v22  ;;  %1488 = vmatprep.subr.bf16.mxu1 %v1561_v22 }
 0x14a   :  { %1466 = vmatpush3.bf16.msra.mxu0 %v1699_v37  ;;  %1490 = vmatpush3.bf16.msra.mxu1 %v1699_v37 }
 0x14b   :  { %1467 = vmatprep.subr.bf16.mxu0 %v1561_v22  ;;  %1491 = vmatprep.subr.bf16.mxu1 %v1561_v22 }
 0x14e   :  { %1469 = vmatpush3.bf16.msra.mxu0 %v1711_v40  ;;  %1493 = vmatpush3.bf16.msra.mxu1 %v1711_v40 }
 0x14f   :  { %1470 = vmatprep.subr.bf16.mxu0 %v1561_v22  ;;  %1494 = vmatprep.subr.bf16.mxu1 %v1561_v22 }
 0x152   :  { %1472 = vmatpush3.bf16.msra.mxu0 %v1723_v43  ;;  %1496 = vmatpush3.bf16.msra.mxu1 %v1723_v43 }
 0x155   :  { %1236 = vmatmul.mubr.msk.f32.vlgmr.msra.gmra.mrb[6].mxu0 %vm700_vm3, %v502_v0  ;;  %1271 = vmatmul.mubr.msk.f32.vlgmr.msra.gmra.mrb[6].mxu1 %vm799_vm4, %v502_v0 }
 0x208   :  { %v593_v4 = vpop.f32.mrb[4].mxu0  ;;  %v692_v5 = vpop.f32.mrb[4].mxu1 }
 0x209   :  { %v594_v6 = vadd.f32 %v914_v3, %v593_v4  ;;  %v693_v7 = vadd.f32 %v914_v3, %v692_v5  ;;  %v1167_v8 = vpop.f32.mrb[5].mxu0  ;;  %v1202_v9 = vpop.f32.mrb[5].mxu1 }
 0x20b   :  { %598 = vst.msk [vmem:[#allocation5] sm:$0x3] %vm597_vm5, %v594_v6  ;;  %697 = vst.msk [vmem:[#allocation5 + $0x2] sm:$0x3] %vm597_vm5, %v693_v7 }
 0x228   :  { %v791_v10 = vpop.f32.mrb[6].mxu0  ;;  %v890_v11 = vpop.f32.mrb[6].mxu1 }
 0x229   :  { %v792_v12 = vadd.f32 %v914_v3, %v791_v10  ;;  %v891_v14 = vadd.f32 %v914_v3, %v890_v11  ;;  %v1237_v15 = vpop.f32.mrb[7].mxu0  ;;  %v1272_v16 = vpop.f32.mrb[7].mxu1 }
 0x22b   :  { %796 = vst.msk [vmem:[#allocation5 + $0x4] sm:$0x3] %vm597_vm5, %v792_v12  ;;  %895 = vst.msk [vmem:[#allocation5 + $0x6] sm:$0x3] %vm597_vm5, %v891_v14 }
 0x22c   :  { %1542 = shalt.err (!%p1539_p12)
}
 0x22d   :  { %s1543_s8 = scalar_lea.hbm %s1803_s6, 128 }
 0x22e   :  { %p1544_p13 = scmp.ne.s32.totalorder %s1803_s6, %s1543_s8  ;;  %p1547_p0 = scmp.lt.u32.totalorder %s1543_s8, %s1803_s6 }
 0x230   :  { %p1549_p1 = pnand %p1547_p0, %p1544_p13 }
 0x232   :  { %1552 = shalt.err (!%p1549_p1)
}
 0x233   :  { %s1565_s12 = smov 32   ;;  %s1566_s13 = smov 2  }
 0x234   :  { %907 = dma.vmem_to_hbm [thread:$0]  %s902_s29, 128, %s1803_s6, [#allocation4], %s1565_s12, %s1565_s12, %s1566_s13  }
 0x235   :  { %1555 = dma.done.wait [#allocation4], 128  }
 0x236   :  { %1556 = vsyncadd [#allocation4], 4294967168 }
 0x237   :  { %911 = vsyncpa [#allocation3], 1 }
 0x238   :  { %912 = vsyncpa [#allocation4], 1 }

</bundles_post_ra>
